<compile_context>
chip_gen: v5e
topology: v5e:2x2
jax: 0.10.0
libtpu: 0.0.40
codegen_flags: <defaults>
</compile_context>

<pallas_src>
import jax
import jax.numpy as jnp
from jax.experimental import pallas as pl
from jax.experimental.pallas import tpu as pltpu

LANES = 128  # lane width of a vreg


def _rosenbrock_kernel(x_ref, out_ref):
    # x_ref: (2, LANES) f32 in VMEM
    #   row 0: theta padded with 1.0 beyond lane n-1
    #   row 1: theta shifted left by one, edge-clamped at lane n-1,
    #          padded with 1.0 beyond lane n-1
    t = x_ref[0:1, :]                      # (1, LANES)
    t_next = x_ref[1:2, :]                 # (1, LANES)

    d = t_next - t                         # == theta[i+1]-theta[i] on valid
    one_minus = 1.0 - t                    # lanes; exactly 0 on pad lanes.

    # Single fused cross-lane reduction (one XLU pass instead of two).
    contrib = 100.0 * (d * d) + one_minus * one_minus          # (1, LANES)
    out_ref[...] = jnp.sum(contrib, axis=1, keepdims=True)     # (1, 1)


def rosenbrock_pallas(theta: jax.Array) -> jax.Array:
    """theta: (n,) vector.  Returns scalar float32 Rosenbrock value."""
    n = theta.shape[0]
    assert n > 1
    assert n <= LANES, "this small kernel assumes theta fits in one vreg row"

    theta_f32 = theta.astype(jnp.float32)

    # Minimal host-side packing (a few ops on <1 KiB, fused by XLA).
    # row0[i] = theta[i]            for i < n, else 1.0
    # row1[i] = theta[min(i+1,n-1)] for i < n, else 1.0
    row0 = jnp.full((LANES,), 1.0, jnp.float32).at[:n].set(theta_f32)
    row1 = row0.at[: n - 1].set(theta_f32[1:])
    packed = jnp.stack([row0, row1])                            # (2, LANES)

    out = pl.pallas_call(
        _rosenbrock_kernel,
        out_shape=jax.ShapeDtypeStruct((1, 1), jnp.float32),
        # Grid-less call: full-array blocks (exempt from the (8,128) rule).
        in_specs=[pl.BlockSpec(memory_space=pltpu.VMEM)],
        out_specs=pl.BlockSpec(memory_space=pltpu.VMEM),
    )(packed)
    return out[0, 0]


def rosenbrock_ref(theta: jax.Array) -> jax.Array:
    tmp0 = theta[1:] - theta[:-1]
    tmp1 = 1.0 - theta
    return 100.0 * jnp.dot(tmp0, tmp0) + jnp.dot(tmp1, tmp1)


if __name__ == "__main__":
    num_parameter = 3
    key = jax.random.PRNGKey(0)
    # Deterministic stand-in for np_rng.normal(size=num_parameter)
    theta = jax.random.normal(key, (num_parameter,), dtype=jnp.float32)

    out = jax.block_until_ready(rosenbrock_pallas(theta))

    ref = rosenbrock_ref(theta)
    assert jnp.allclose(out, ref, rtol=1e-5, atol=1e-5), (out, ref)

    print("KERNEL_OK")
</pallas_src>

<mosaic_0001>
module attributes {stable_mosaic.version = 11 : i64} {
  func.func @_rosenbrock_kernel(%arg0: memref<2x128xf32, #tpu.memory_space<vmem>>, %arg1: memref<1x1xf32, #tpu.memory_space<vmem>>) attributes {dimension_semantics = [], scalar_prefetch = 0 : i64, scratch_operands = 0 : i64, tpu.core_type = #tpu.core_type<tc>} {
    %c0 = arith.constant 0 : index
    %c0_0 = arith.constant 0 : index
    %0 = vector.load %arg0[%c0, %c0_0] : memref<2x128xf32, #tpu.memory_space<vmem>>, vector<1x128xf32>
    %c1 = arith.constant 1 : index
    %c0_1 = arith.constant 0 : index
    %1 = vector.load %arg0[%c1, %c0_1] : memref<2x128xf32, #tpu.memory_space<vmem>>, vector<1x128xf32>
    %2 = arith.subf %1, %0 : vector<1x128xf32>
    %cst = arith.constant 1.000000e+00 : f32
    %3 = vector.broadcast %cst : f32 to vector<1x128xf32>
    %4 = arith.subf %3, %0 : vector<1x128xf32>
    %5 = arith.mulf %2, %2 : vector<1x128xf32>
    %cst_2 = arith.constant 1.000000e+02 : f32
    %6 = vector.broadcast %cst_2 : f32 to vector<1x128xf32>
    %7 = arith.mulf %6, %5 : vector<1x128xf32>
    %8 = arith.mulf %4, %4 : vector<1x128xf32>
    %9 = arith.addf %7, %8 : vector<1x128xf32>
    %cst_3 = arith.constant dense<0.000000e+00> : vector<1xf32>
    %10 = vector.multi_reduction <add>, %9, %cst_3 [1] : vector<1x128xf32> to vector<1xf32>
    %11 = vector.shape_cast %10 : vector<1xf32> to vector<1x1xf32>
    %c0_4 = arith.constant 0 : index
    %c0_5 = arith.constant 0 : index
    %12 = vector.load %arg1[%c0_4, %c0_5] : memref<1x1xf32, #tpu.memory_space<vmem>>, vector<1x1xf32>
    tpu.vector_store %arg1[%c0_4, %c0_5], %11 {strides = array<i32>} : memref<1x1xf32, #tpu.memory_space<vmem>>, vector<1x1xf32>,
    return
  }
}

</mosaic_0001>

<bundles_post_ra>
// kernel: tpu_custom_call.1
= control target key start
LH: loop header
LB: loop body
LE: loop exit
PB: predicated region body
PF: predicated region fallthrough
CT: control target
= control target key end

     0   :  { %6 = vsyncpa [#allocation3], 0  ;;  %s126_s0 = inlined_call_operand.hbm [shape: f32[2,128], index: 0, kind: input, shape index: {}]   ;;  %s127_s1 = inlined_call_operand.hbm [shape: f32[1,1], index: 1, kind: output, shape index: {}]  }
   0x1   :  { %7 = vsyncpa [#allocation4], 0  ;;  %s13_s8 = sshll.u32 %s126_s0, 4  ;;  %s108_s9 = smov [#allocation2]   ;;  %s14_s8 = int_to_ptr.hbm [resolvable:$true] %s13_s8 }
   0x2   :  { %s15_s10 = sshll.u32 %s108_s9, 4  ;;  %s16_s10 = int_to_ptr.vmem [resolvable:$true] %s15_s10 }
   0x3   :  { %18 = dma.hbm_to_vmem [thread:$0]  %s14_s8, 32, %s16_s10, [#allocation3]  }
   0x4   :  { %104 = dma.done.wait [#allocation3], 32  }
   0x5   :  { %105 = vsyncadd [#allocation3], 4294967264  ;;  %v23_v0 = vld [vmem:[#allocation2] sm:$0x1]  ;;  %v24_v1 = vld [vmem:[#allocation2 + $0x1] sm:$0x1] }
   0x6   :  { %v25_v2 = vsub.f32 %v24_v1, %v23_v0  ;;  %v26_v3 = vsub.f32 1.0, %v23_v0  ;;  %vm31_vm0 = vcmask 1040384   ;;  %s109_s11 = smov [#allocation5]   ;;  %s44_s14 = sshll.u32 %s127_s1, 4  ;;  %vm35_vm1 = vcmask 0   ;;  %s45_s14 = int_to_ptr.hbm [resolvable:$true] %s44_s14 }
   0x7   :  { %s42_s0 = sshll.u32 %s109_s11, 4  ;;  %s43_s0 = int_to_ptr.vmem [resolvable:$true] %s42_s0 }
   0x8   :  { %v27_v4 = vmul.f32 %v25_v2, %v25_v2  ;;  %v29_v5 = vmul.f32 %v26_v3, %v26_v3 }
   0xa   :  { %v28_v6 = vmul.f32 100.0, %v27_v4 }
   0xc   :  { %v30_v7 = vadd.f32 %v29_v5, %v28_v6 }
   0xe   :  { %v32_v8 = vsel %vm31_vm0, %v30_v7, 0.0 }
   0xf   :  { %33 = vadd.xlane.f32.xlu0 %v32_v8 }
  0x82   :  { %v34_v9 = vpop.xlane.xlu0 %33 }
  0x83   :  { %36 = vst.msk [vmem:[#allocation5] sm:$0x1] %vm35_vm1, %v34_v9 }
  0x84   :  { %47 = dma.vmem_to_hbm [thread:$0]  %s43_s0, 16, %s45_s14, [#allocation4]  }
  0x85   :  { %106 = dma.done.wait [#allocation4], 16  }
  0x86   :  { %107 = vsyncadd [#allocation4], 4294967280 }
  0x87   :  { %52 = vsyncpa [#allocation3], 1 }
  0x88   :  { %53 = vsyncpa [#allocation4], 1 }

</bundles_post_ra>
